<compile_context>
chip_gen: v6e
topology: v6e:2x2x1
jax: 0.10.0
libtpu: 0.0.40
codegen_flags: <defaults>
</compile_context>

<pallas_src>
import math
import functools

import jax
import jax.numpy as jnp
from jax import lax
from jax.experimental import pallas as pl
from jax.experimental.pallas import tpu as pltpu


# ----------------------------------------------------------------------------
# Kernel: one grid step == one batch element.  Per-head projections, RoPE,
# softmax attention and the accumulated output projection all run in VMEM.
# ----------------------------------------------------------------------------
def _attn_rope_kernel(x_ref, wq_ref, bq_ref, wk_ref, bk_ref, wv_ref, bv_ref,
                      wo_ref, bo_ref, cos_ref, sin_ref, p_ref, o_ref,
                      *, n_heads, head_dim):
    x = x_ref[0]                                  # (s, e)
    cos = cos_ref[...]                            # (s, hd)
    sin = sin_ref[...]                            # (s, hd)
    p = p_ref[...]                                # (hd, hd) signed pair-swap matrix
    scale = 1.0 / float(head_dim) ** 0.5

    def rope(t):                                  # t: (s, hd)
        # shifted[:, 2i] = -t[:, 2i+1], shifted[:, 2i+1] = t[:, 2i]
        # Expressed as one tiny MXU matmul with a host-built +/-1 permutation;
        # robust to lower and negligible FLOPs at (s, hd) = (17, 16).
        shifted = jnp.dot(t, p, preferred_element_type=jnp.float32)
        return t * cos + shifted * sin

    acc = None
    for h in range(n_heads):                      # static loop; n_heads is small
        qh = jnp.dot(x, wq_ref[h], preferred_element_type=jnp.float32) + bq_ref[h]
        kh = jnp.dot(x, wk_ref[h], preferred_element_type=jnp.float32) + bk_ref[h]
        vh = jnp.dot(x, wv_ref[h], preferred_element_type=jnp.float32) + bv_ref[h]
        qh = rope(qh)
        kh = rope(kh)
        # q @ k^T without materializing a transpose: contract last dims of both.
        scores = lax.dot_general(qh, kh, (((1,), (1,)), ((), ())),
                                 preferred_element_type=jnp.float32) * scale
        scores = scores - jnp.max(scores, axis=-1, keepdims=True)
        e_s = jnp.exp(scores)
        probs = e_s * pl.reciprocal(jnp.sum(e_s, axis=-1, keepdims=True), approx=True)
        ctx_h = jnp.dot(probs, vh, preferred_element_type=jnp.float32)          # (s, hd)
        contrib = jnp.dot(ctx_h, wo_ref[h], preferred_element_type=jnp.float32)  # (s, e)
        acc = contrib if acc is None else acc + contrib
    o_ref[0] = (acc + bo_ref[...]).astype(o_ref.dtype)


def self_attention_with_rope(x, wq, bq, wk, bk, wv, bv, wo, bo,
                             cos_head, sin_head, n_heads):
    b, s, e = x.shape
    hd = e // n_heads
    assert n_heads * hd == e

    # Host-side re-layout: per-head weight slabs so the kernel indexes heads on
    # the leading axis (no in-kernel lane slicing / concat / transposes).
    wq3 = wq.reshape(e, n_heads, hd).transpose(1, 0, 2)       # (H, e, hd)
    wk3 = wk.reshape(e, n_heads, hd).transpose(1, 0, 2)
    wv3 = wv.reshape(e, n_heads, hd).transpose(1, 0, 2)
    bq3 = bq.reshape(n_heads, 1, hd)
    bk3 = bk.reshape(n_heads, 1, hd)
    bv3 = bv.reshape(n_heads, 1, hd)
    wo3 = wo.reshape(n_heads, hd, e)                          # (H, hd, e)

    cos_t = cos_head.astype(jnp.float32)                      # (s, hd)
    sin_t = sin_head.astype(jnp.float32)                      # (s, hd)

    # Signed pair-swap permutation P: (t @ P)[:, 2i] = -t[:, 2i+1],
    #                                 (t @ P)[:, 2i+1] = t[:, 2i].
    idx = jnp.arange(hd)
    even_j = idx[::2]
    odd_j = idx[1::2]
    p_mat = jnp.zeros((hd, hd), jnp.float32)
    p_mat = p_mat.at[even_j + 1, even_j].set(-1.0)
    p_mat = p_mat.at[odd_j - 1, odd_j].set(1.0)

    kernel = functools.partial(_attn_rope_kernel, n_heads=n_heads, head_dim=hd)

    def const2d(shape):
        return pl.BlockSpec(shape, lambda i: (0, 0))

    def const3d(shape):
        return pl.BlockSpec(shape, lambda i: (0, 0, 0))

    return pl.pallas_call(
        kernel,
        out_shape=jax.ShapeDtypeStruct((b, s, e), x.dtype),
        grid=(b,),
        in_specs=[
            pl.BlockSpec((1, s, e), lambda i: (i, 0, 0)),           # x
            const3d((n_heads, e, hd)), const3d((n_heads, 1, hd)),   # Wq, bq
            const3d((n_heads, e, hd)), const3d((n_heads, 1, hd)),   # Wk, bk
            const3d((n_heads, e, hd)), const3d((n_heads, 1, hd)),   # Wv, bv
            const3d((n_heads, hd, e)), const2d((1, e)),             # Wo, bo
            const2d((s, hd)), const2d((s, hd)),                     # cos, sin
            const2d((hd, hd)),                                      # pair-swap P
        ],
        out_specs=pl.BlockSpec((1, s, e), lambda i: (i, 0, 0)),
        compiler_params=pltpu.CompilerParams(
            dimension_semantics=("parallel",),       # batch=2 -> both v7x TCs
            vmem_limit_bytes=32 * 1024 * 1024,
        ),
    )(x, wq3, bq3, wk3, bk3, wv3, bv3, wo3, bo, cos_t, sin_t, p_mat)


# ----------------------------------------------------------------------------
# RoPE table construction (mirrors RotatoryPositionEmbedding2D.__init__).
# ----------------------------------------------------------------------------
def make_rope_tables(seq_len, head_dim):
    rope_dim = head_dim // 2                     # "embed_dim" inside the RoPE module
    n_patches = seq_len - 1
    g = int(math.isqrt(n_patches))
    assert g * g == n_patches, "n_patches must be a perfect square"

    x_pos = jnp.tile(jnp.arange(1, g + 1, dtype=jnp.float32), g).reshape(-1, 1)
    y_pos = jnp.repeat(jnp.arange(1, g + 1, dtype=jnp.float32), g).reshape(-1, 1)

    def rope1d(pos):
        pos = jnp.pad(pos, ((1, 0), (0, 0)))     # CLS token at position 0
        thetas = -2.0 * jnp.arange(1, rope_dim // 2 + 1, dtype=jnp.float32) / rope_dim
        thetas = jnp.repeat(thetas, 2)
        thetas = jnp.power(10000.0, thetas)
        vals = pos * thetas                      # (seq_len, rope_dim)
        return jnp.sin(vals), jnp.cos(vals)

    x_sin, x_cos = rope1d(x_pos)
    y_sin, y_cos = rope1d(y_pos)
    cos_head = jnp.concatenate([x_cos, y_cos], axis=-1)   # (seq_len, head_dim)
    sin_head = jnp.concatenate([x_sin, y_sin], axis=-1)
    return cos_head, sin_head


# ----------------------------------------------------------------------------
# Pure-JAX reference (mirrors the PyTorch forward, strided-slice RoPE included).
# ----------------------------------------------------------------------------
def ref_forward(x, wq, bq, wk, bk, wv, bv, wo, bo, cos_head, sin_head, n_heads):
    b, s, e = x.shape
    hd = e // n_heads
    half = hd // 2

    def proj(w, bias):
        y = x @ w + bias
        return y.reshape(b, s, n_heads, hd).transpose(0, 2, 1, 3)   # (b, H, s, hd)

    q, k, v = proj(wq, bq), proj(wk, bk), proj(wv, bv)

    def rot1(a, cos, sin):
        shifted = jnp.stack([-a[..., 1::2], a[..., ::2]], axis=-1).reshape(a.shape)
        return a * cos + shifted * sin

    def rope(t):
        ax = rot1(t[..., :half], cos_head[:, :half], sin_head[:, :half])
        ay = rot1(t[..., half:], cos_head[:, half:], sin_head[:, half:])
        return jnp.concatenate([ax, ay], axis=-1)

    q, k = rope(q), rope(k)
    attn = jnp.einsum("bhqd,bhkd->bhqk", q, k) / float(hd) ** 0.5
    attn = jax.nn.softmax(attn, axis=-1)
    ctx = jnp.einsum("bhqk,bhkd->bhqd", attn, v)
    ctx = ctx.transpose(0, 2, 1, 3).reshape(b, s, e)
    return ctx @ wo + bo


if __name__ == "__main__":
    embed_dim, n_heads, seq_len, batch = 32, 2, 17, 2      # 16 patches (4x4) + CLS
    head_dim = embed_dim // n_heads                        # 16 (divisible by 4)

    key = jax.random.PRNGKey(0)
    ks = jax.random.split(key, 9)
    scale = 0.1
    wq = jax.random.normal(ks[0], (embed_dim, embed_dim), jnp.float32) * scale
    wk = jax.random.normal(ks[1], (embed_dim, embed_dim), jnp.float32) * scale
    wv = jax.random.normal(ks[2], (embed_dim, embed_dim), jnp.float32) * scale
    wo = jax.random.normal(ks[3], (embed_dim, embed_dim), jnp.float32) * scale
    bq = jax.random.normal(ks[4], (1, embed_dim), jnp.float32) * scale
    bk = jax.random.normal(ks[5], (1, embed_dim), jnp.float32) * scale
    bv = jax.random.normal(ks[6], (1, embed_dim), jnp.float32) * scale
    bo = jax.random.normal(ks[7], (1, embed_dim), jnp.float32) * scale
    x = jax.random.normal(ks[8], (batch, seq_len, embed_dim), jnp.float32)

    cos_head, sin_head = make_rope_tables(seq_len, head_dim)   # (s, hd)

    out = self_attention_with_rope(x, wq, bq, wk, bk, wv, bv, wo, bo,
                                   cos_head, sin_head, n_heads)
    out = jax.block_until_ready(out)

    ref = ref_forward(x, wq, bq, wk, bk, wv, bv, wo, bo, cos_head, sin_head, n_heads)
    assert out.shape == (batch, seq_len, embed_dim)
    # Tolerance 1e-3: the only approximate op is the EUP reciprocal in the
    # softmax normalization; structural errors would be O(0.1) or larger.
    assert jnp.allclose(out, ref, atol=1e-3, rtol=1e-3), \
        f"max abs diff {jnp.max(jnp.abs(out - ref))}"

    print("KERNEL_OK")
</pallas_src>

<mosaic_0001>
module attributes {stable_mosaic.version = 11 : i64} {
  func.func @_attn_rope_kernel(%arg0: i32, %arg1: memref<1x17x32xf32, #tpu.memory_space<vmem>>, %arg2: memref<2x32x16xf32, #tpu.memory_space<vmem>>, %arg3: memref<2x1x16xf32, #tpu.memory_space<vmem>>, %arg4: memref<2x32x16xf32, #tpu.memory_space<vmem>>, %arg5: memref<2x1x16xf32, #tpu.memory_space<vmem>>, %arg6: memref<2x32x16xf32, #tpu.memory_space<vmem>>, %arg7: memref<2x1x16xf32, #tpu.memory_space<vmem>>, %arg8: memref<2x16x32xf32, #tpu.memory_space<vmem>>, %arg9: memref<1x32xf32, #tpu.memory_space<vmem>>, %arg10: memref<17x16xf32, #tpu.memory_space<vmem>>, %arg11: memref<17x16xf32, #tpu.memory_space<vmem>>, %arg12: memref<16x16xf32, #tpu.memory_space<vmem>>, %arg13: memref<1x17x32xf32, #tpu.memory_space<vmem>>) attributes {dimension_semantics = [#tpu.dimension_semantics<parallel>], iteration_bounds = array<i64: 2>, scalar_prefetch = 0 : i64, scratch_operands = 0 : i64, tpu.core_type = #tpu.core_type<tc>, window_params = [{transform_indices = @transform_0, window_bounds = array<i64: 1, 17, 32>}, {pipeline_mode = #tpu.pipeline_mode<synchronous>, transform_indices = @transform_1, window_bounds = array<i64: 2, 32, 16>}, {pipeline_mode = #tpu.pipeline_mode<synchronous>, transform_indices = @transform_2, window_bounds = array<i64: 2, 1, 16>}, {pipeline_mode = #tpu.pipeline_mode<synchronous>, transform_indices = @transform_3, window_bounds = array<i64: 2, 32, 16>}, {pipeline_mode = #tpu.pipeline_mode<synchronous>, transform_indices = @transform_4, window_bounds = array<i64: 2, 1, 16>}, {pipeline_mode = #tpu.pipeline_mode<synchronous>, transform_indices = @transform_5, window_bounds = array<i64: 2, 32, 16>}, {pipeline_mode = #tpu.pipeline_mode<synchronous>, transform_indices = @transform_6, window_bounds = array<i64: 2, 1, 16>}, {pipeline_mode = #tpu.pipeline_mode<synchronous>, transform_indices = @transform_7, window_bounds = array<i64: 2, 16, 32>}, {pipeline_mode = #tpu.pipeline_mode<synchronous>, transform_indices = @transform_8, window_bounds = array<i64: 1, 32>}, {pipeline_mode = #tpu.pipeline_mode<synchronous>, transform_indices = @transform_9, window_bounds = array<i64: 17, 16>}, {pipeline_mode = #tpu.pipeline_mode<synchronous>, transform_indices = @transform_10, window_bounds = array<i64: 17, 16>}, {pipeline_mode = #tpu.pipeline_mode<synchronous>, transform_indices = @transform_11, window_bounds = array<i64: 16, 16>}, {transform_indices = @transform_12, window_bounds = array<i64: 1, 17, 32>}]} {
    %c0 = arith.constant 0 : index
    %c0_0 = arith.constant 0 : index
    %c0_1 = arith.constant 0 : index
    %0 = vector.load %arg1[%c0, %c0_0, %c0_1] : memref<1x17x32xf32, #tpu.memory_space<vmem>>, vector<1x17x32xf32>
    %1 = vector.shape_cast %0 : vector<1x17x32xf32> to vector<17x32xf32>
    %c0_2 = arith.constant 0 : index
    %c0_3 = arith.constant 0 : index
    %2 = vector.load %arg10[%c0_2, %c0_3] : memref<17x16xf32, #tpu.memory_space<vmem>>, vector<17x16xf32>
    %c0_4 = arith.constant 0 : index
    %c0_5 = arith.constant 0 : index
    %3 = vector.load %arg11[%c0_4, %c0_5] : memref<17x16xf32, #tpu.memory_space<vmem>>, vector<17x16xf32>
    %c0_6 = arith.constant 0 : index
    %c0_7 = arith.constant 0 : index
    %4 = vector.load %arg12[%c0_6, %c0_7] : memref<16x16xf32, #tpu.memory_space<vmem>>, vector<16x16xf32>
    %c0_8 = arith.constant 0 : index
    %c0_9 = arith.constant 0 : index
    %c0_10 = arith.constant 0 : index
    %5 = vector.load %arg2[%c0_8, %c0_9, %c0_10] : memref<2x32x16xf32, #tpu.memory_space<vmem>>, vector<1x32x16xf32>
    %6 = vector.shape_cast %5 : vector<1x32x16xf32> to vector<32x16xf32>
    %cst = arith.constant dense<0.000000e+00> : vector<17x16xf32>
    %7 = tpu.matmul %1, %6, %cst {dimension_numbers = #tpu.dot_dimension_numbers<[1], [0], [0], [1], [0, 0, 1, 1], [], []>} : vector<17x32xf32>, vector<32x16xf32>, vector<17x16xf32> -> vector<17x16xf32>
    %c0_11 = arith.constant 0 : index
    %c0_12 = arith.constant 0 : index
    %c0_13 = arith.constant 0 : index
    %8 = vector.load %arg3[%c0_11, %c0_12, %c0_13] : memref<2x1x16xf32, #tpu.memory_space<vmem>>, vector<1x1x16xf32>
    %9 = vector.shape_cast %8 : vector<1x1x16xf32> to vector<1x16xf32>
    %10 = vector.broadcast %9 : vector<1x16xf32> to vector<17x16xf32>
    %11 = arith.addf %7, %10 : vector<17x16xf32>
    %c0_14 = arith.constant 0 : index
    %c0_15 = arith.constant 0 : index
    %c0_16 = arith.constant 0 : index
    %12 = vector.load %arg4[%c0_14, %c0_15, %c0_16] : memref<2x32x16xf32, #tpu.memory_space<vmem>>, vector<1x32x16xf32>
    %13 = vector.shape_cast %12 : vector<1x32x16xf32> to vector<32x16xf32>
    %cst_17 = arith.constant dense<0.000000e+00> : vector<17x16xf32>
    %14 = tpu.matmul %1, %13, %cst_17 {dimension_numbers = #tpu.dot_dimension_numbers<[1], [0], [0], [1], [0, 0, 1, 1], [], []>} : vector<17x32xf32>, vector<32x16xf32>, vector<17x16xf32> -> vector<17x16xf32>
    %c0_18 = arith.constant 0 : index
    %c0_19 = arith.constant 0 : index
    %c0_20 = arith.constant 0 : index
    %15 = vector.load %arg5[%c0_18, %c0_19, %c0_20] : memref<2x1x16xf32, #tpu.memory_space<vmem>>, vector<1x1x16xf32>
    %16 = vector.shape_cast %15 : vector<1x1x16xf32> to vector<1x16xf32>
    %17 = vector.broadcast %16 : vector<1x16xf32> to vector<17x16xf32>
    %18 = arith.addf %14, %17 : vector<17x16xf32>
    %c0_21 = arith.constant 0 : index
    %c0_22 = arith.constant 0 : index
    %c0_23 = arith.constant 0 : index
    %19 = vector.load %arg6[%c0_21, %c0_22, %c0_23] : memref<2x32x16xf32, #tpu.memory_space<vmem>>, vector<1x32x16xf32>
    %20 = vector.shape_cast %19 : vector<1x32x16xf32> to vector<32x16xf32>
    %cst_24 = arith.constant dense<0.000000e+00> : vector<17x16xf32>
    %21 = tpu.matmul %1, %20, %cst_24 {dimension_numbers = #tpu.dot_dimension_numbers<[1], [0], [0], [1], [0, 0, 1, 1], [], []>} : vector<17x32xf32>, vector<32x16xf32>, vector<17x16xf32> -> vector<17x16xf32>
    %c0_25 = arith.constant 0 : index
    %c0_26 = arith.constant 0 : index
    %c0_27 = arith.constant 0 : index
    %22 = vector.load %arg7[%c0_25, %c0_26, %c0_27] : memref<2x1x16xf32, #tpu.memory_space<vmem>>, vector<1x1x16xf32>
    %23 = vector.shape_cast %22 : vector<1x1x16xf32> to vector<1x16xf32>
    %24 = vector.broadcast %23 : vector<1x16xf32> to vector<17x16xf32>
    %25 = arith.addf %21, %24 : vector<17x16xf32>
    %cst_28 = arith.constant dense<0.000000e+00> : vector<17x16xf32>
    %26 = tpu.matmul %11, %4, %cst_28 {dimension_numbers = #tpu.dot_dimension_numbers<[1], [0], [0], [1], [0, 0, 1, 1], [], []>} : vector<17x16xf32>, vector<16x16xf32>, vector<17x16xf32> -> vector<17x16xf32>
    %27 = arith.mulf %11, %2 : vector<17x16xf32>
    %28 = arith.mulf %26, %3 : vector<17x16xf32>
    %29 = arith.addf %27, %28 : vector<17x16xf32>
    %cst_29 = arith.constant dense<0.000000e+00> : vector<17x16xf32>
    %30 = tpu.matmul %18, %4, %cst_29 {dimension_numbers = #tpu.dot_dimension_numbers<[1], [0], [0], [1], [0, 0, 1, 1], [], []>} : vector<17x16xf32>, vector<16x16xf32>, vector<17x16xf32> -> vector<17x16xf32>
    %31 = arith.mulf %18, %2 : vector<17x16xf32>
    %32 = arith.mulf %30, %3 : vector<17x16xf32>
    %33 = arith.addf %31, %32 : vector<17x16xf32>
    %cst_30 = arith.constant dense<0.000000e+00> : vector<17x17xf32>
    %34 = tpu.matmul %29, %33, %cst_30 {dimension_numbers = #tpu.dot_dimension_numbers<[1], [1], [0], [0], [0, 0, 1, 0], [], []>} : vector<17x16xf32>, vector<17x16xf32>, vector<17x17xf32> -> vector<17x17xf32>
    %cst_31 = arith.constant 2.500000e-01 : f32
    %35 = vector.broadcast %cst_31 : f32 to vector<17x17xf32>
    %36 = arith.mulf %34, %35 : vector<17x17xf32>
    %cst_32 = arith.constant dense<0xFF800000> : vector<17xf32>
    %37 = vector.multi_reduction <maximumf>, %36, %cst_32 [1] : vector<17x17xf32> to vector<17xf32>
    %38 = vector.shape_cast %37 : vector<17xf32> to vector<17x1xf32>
    %39 = vector.broadcast %38 : vector<17x1xf32> to vector<17x17xf32>
    %40 = arith.subf %36, %39 : vector<17x17xf32>
    %41 = math.exp %40 : vector<17x17xf32>
    %cst_33 = arith.constant dense<0.000000e+00> : vector<17xf32>
    %42 = vector.multi_reduction <add>, %41, %cst_33 [1] : vector<17x17xf32> to vector<17xf32>
    %43 = vector.shape_cast %42 : vector<17xf32> to vector<17x1xf32>
    %44 = tpu.reciprocal %43 {approx = true} : vector<17x1xf32> -> vector<17x1xf32>
    %45 = vector.broadcast %44 : vector<17x1xf32> to vector<17x17xf32>
    %46 = arith.mulf %41, %45 : vector<17x17xf32>
    %cst_34 = arith.constant dense<0.000000e+00> : vector<17x16xf32>
    %47 = tpu.matmul %46, %25, %cst_34 {dimension_numbers = #tpu.dot_dimension_numbers<[1], [0], [0], [1], [0, 0, 1, 1], [], []>} : vector<17x17xf32>, vector<17x16xf32>, vector<17x16xf32> -> vector<17x16xf32>
    %c0_35 = arith.constant 0 : index
    %c0_36 = arith.constant 0 : index
    %c0_37 = arith.constant 0 : index
    %48 = vector.load %arg8[%c0_35, %c0_36, %c0_37] : memref<2x16x32xf32, #tpu.memory_space<vmem>>, vector<1x16x32xf32>
    %49 = vector.shape_cast %48 : vector<1x16x32xf32> to vector<16x32xf32>
    %cst_38 = arith.constant dense<0.000000e+00> : vector<17x32xf32>
    %50 = tpu.matmul %47, %49, %cst_38 {dimension_numbers = #tpu.dot_dimension_numbers<[1], [0], [0], [1], [0, 0, 1, 1], [], []>} : vector<17x16xf32>, vector<16x32xf32>, vector<17x32xf32> -> vector<17x32xf32>
    %c1 = arith.constant 1 : index
    %c0_39 = arith.constant 0 : index
    %c0_40 = arith.constant 0 : index
    %51 = vector.load %arg2[%c1, %c0_39, %c0_40] : memref<2x32x16xf32, #tpu.memory_space<vmem>>, vector<1x32x16xf32>
    %52 = vector.shape_cast %51 : vector<1x32x16xf32> to vector<32x16xf32>
    %cst_41 = arith.constant dense<0.000000e+00> : vector<17x16xf32>
    %53 = tpu.matmul %1, %52, %cst_41 {dimension_numbers = #tpu.dot_dimension_numbers<[1], [0], [0], [1], [0, 0, 1, 1], [], []>} : vector<17x32xf32>, vector<32x16xf32>, vector<17x16xf32> -> vector<17x16xf32>
    %c1_42 = arith.constant 1 : index
    %c0_43 = arith.constant 0 : index
    %c0_44 = arith.constant 0 : index
    %54 = vector.load %arg3[%c1_42, %c0_43, %c0_44] : memref<2x1x16xf32, #tpu.memory_space<vmem>>, vector<1x1x16xf32>
    %55 = vector.shape_cast %54 : vector<1x1x16xf32> to vector<1x16xf32>
    %56 = vector.broadcast %55 : vector<1x16xf32> to vector<17x16xf32>
    %57 = arith.addf %53, %56 : vector<17x16xf32>
    %c1_45 = arith.constant 1 : index
    %c0_46 = arith.constant 0 : index
    %c0_47 = arith.constant 0 : index
    %58 = vector.load %arg4[%c1_45, %c0_46, %c0_47] : memref<2x32x16xf32, #tpu.memory_space<vmem>>, vector<1x32x16xf32>
    %59 = vector.shape_cast %58 : vector<1x32x16xf32> to vector<32x16xf32>
    %cst_48 = arith.constant dense<0.000000e+00> : vector<17x16xf32>
    %60 = tpu.matmul %1, %59, %cst_48 {dimension_numbers = #tpu.dot_dimension_numbers<[1], [0], [0], [1], [0, 0, 1, 1], [], []>} : vector<17x32xf32>, vector<32x16xf32>, vector<17x16xf32> -> vector<17x16xf32>
    %c1_49 = arith.constant 1 : index
    %c0_50 = arith.constant 0 : index
    %c0_51 = arith.constant 0 : index
    %61 = vector.load %arg5[%c1_49, %c0_50, %c0_51] : memref<2x1x16xf32, #tpu.memory_space<vmem>>, vector<1x1x16xf32>
    %62 = vector.shape_cast %61 : vector<1x1x16xf32> to vector<1x16xf32>
    %63 = vector.broadcast %62 : vector<1x16xf32> to vector<17x16xf32>
    %64 = arith.addf %60, %63 : vector<17x16xf32>
    %c1_52 = arith.constant 1 : index
    %c0_53 = arith.constant 0 : index
    %c0_54 = arith.constant 0 : index
    %65 = vector.load %arg6[%c1_52, %c0_53, %c0_54] : memref<2x32x16xf32, #tpu.memory_space<vmem>>, vector<1x32x16xf32>
    %66 = vector.shape_cast %65 : vector<1x32x16xf32> to vector<32x16xf32>
    %cst_55 = arith.constant dense<0.000000e+00> : vector<17x16xf32>
    %67 = tpu.matmul %1, %66, %cst_55 {dimension_numbers = #tpu.dot_dimension_numbers<[1], [0], [0], [1], [0, 0, 1, 1], [], []>} : vector<17x32xf32>, vector<32x16xf32>, vector<17x16xf32> -> vector<17x16xf32>
    %c1_56 = arith.constant 1 : index
    %c0_57 = arith.constant 0 : index
    %c0_58 = arith.constant 0 : index
    %68 = vector.load %arg7[%c1_56, %c0_57, %c0_58] : memref<2x1x16xf32, #tpu.memory_space<vmem>>, vector<1x1x16xf32>
    %69 = vector.shape_cast %68 : vector<1x1x16xf32> to vector<1x16xf32>
    %70 = vector.broadcast %69 : vector<1x16xf32> to vector<17x16xf32>
    %71 = arith.addf %67, %70 : vector<17x16xf32>
    %cst_59 = arith.constant dense<0.000000e+00> : vector<17x16xf32>
    %72 = tpu.matmul %57, %4, %cst_59 {dimension_numbers = #tpu.dot_dimension_numbers<[1], [0], [0], [1], [0, 0, 1, 1], [], []>} : vector<17x16xf32>, vector<16x16xf32>, vector<17x16xf32> -> vector<17x16xf32>
    %73 = arith.mulf %57, %2 : vector<17x16xf32>
    %74 = arith.mulf %72, %3 : vector<17x16xf32>
    %75 = arith.addf %73, %74 : vector<17x16xf32>
    %cst_60 = arith.constant dense<0.000000e+00> : vector<17x16xf32>
    %76 = tpu.matmul %64, %4, %cst_60 {dimension_numbers = #tpu.dot_dimension_numbers<[1], [0], [0], [1], [0, 0, 1, 1], [], []>} : vector<17x16xf32>, vector<16x16xf32>, vector<17x16xf32> -> vector<17x16xf32>
    %77 = arith.mulf %64, %2 : vector<17x16xf32>
    %78 = arith.mulf %76, %3 : vector<17x16xf32>
    %79 = arith.addf %77, %78 : vector<17x16xf32>
    %cst_61 = arith.constant dense<0.000000e+00> : vector<17x17xf32>
    %80 = tpu.matmul %75, %79, %cst_61 {dimension_numbers = #tpu.dot_dimension_numbers<[1], [1], [0], [0], [0, 0, 1, 0], [], []>} : vector<17x16xf32>, vector<17x16xf32>, vector<17x17xf32> -> vector<17x17xf32>
    %cst_62 = arith.constant 2.500000e-01 : f32
    %81 = vector.broadcast %cst_62 : f32 to vector<17x17xf32>
    %82 = arith.mulf %80, %81 : vector<17x17xf32>
    %cst_63 = arith.constant dense<0xFF800000> : vector<17xf32>
    %83 = vector.multi_reduction <maximumf>, %82, %cst_63 [1] : vector<17x17xf32> to vector<17xf32>
    %84 = vector.shape_cast %83 : vector<17xf32> to vector<17x1xf32>
    %85 = vector.broadcast %84 : vector<17x1xf32> to vector<17x17xf32>
    %86 = arith.subf %82, %85 : vector<17x17xf32>
    %87 = math.exp %86 : vector<17x17xf32>
    %cst_64 = arith.constant dense<0.000000e+00> : vector<17xf32>
    %88 = vector.multi_reduction <add>, %87, %cst_64 [1] : vector<17x17xf32> to vector<17xf32>
    %89 = vector.shape_cast %88 : vector<17xf32> to vector<17x1xf32>
    %90 = tpu.reciprocal %89 {approx = true} : vector<17x1xf32> -> vector<17x1xf32>
    %91 = vector.broadcast %90 : vector<17x1xf32> to vector<17x17xf32>
    %92 = arith.mulf %87, %91 : vector<17x17xf32>
    %cst_65 = arith.constant dense<0.000000e+00> : vector<17x16xf32>
    %93 = tpu.matmul %92, %71, %cst_65 {dimension_numbers = #tpu.dot_dimension_numbers<[1], [0], [0], [1], [0, 0, 1, 1], [], []>} : vector<17x17xf32>, vector<17x16xf32>, vector<17x16xf32> -> vector<17x16xf32>
    %c1_66 = arith.constant 1 : index
    %c0_67 = arith.constant 0 : index
    %c0_68 = arith.constant 0 : index
    %94 = vector.load %arg8[%c1_66, %c0_67, %c0_68] : memref<2x16x32xf32, #tpu.memory_space<vmem>>, vector<1x16x32xf32>
    %95 = vector.shape_cast %94 : vector<1x16x32xf32> to vector<16x32xf32>
    %cst_69 = arith.constant dense<0.000000e+00> : vector<17x32xf32>
    %96 = tpu.matmul %93, %95, %cst_69 {dimension_numbers = #tpu.dot_dimension_numbers<[1], [0], [0], [1], [0, 0, 1, 1], [], []>} : vector<17x16xf32>, vector<16x32xf32>, vector<17x32xf32> -> vector<17x32xf32>
    %97 = arith.addf %50, %96 : vector<17x32xf32>
    %c0_70 = arith.constant 0 : index
    %c0_71 = arith.constant 0 : index
    %98 = vector.load %arg9[%c0_70, %c0_71] : memref<1x32xf32, #tpu.memory_space<vmem>>, vector<1x32xf32>
    %99 = vector.broadcast %98 : vector<1x32xf32> to vector<17x32xf32>
    %100 = arith.addf %97, %99 : vector<17x32xf32>
    %c0_72 = arith.constant 0 : index
    %c0_73 = arith.constant 0 : index
    %c0_74 = arith.constant 0 : index
    %101 = vector.load %arg13[%c0_72, %c0_73, %c0_74] : memref<1x17x32xf32, #tpu.memory_space<vmem>>, vector<1x17x32xf32>
    %102 = vector.shape_cast %101 : vector<1x17x32xf32> to vector<17x32xf32>
    %103 = vector.shape_cast %100 : vector<17x32xf32> to vector<1x17x32xf32>
    tpu.vector_store %arg13[%c0_72, %c0_73, %c0_74], %103 {strides = array<i32>} : memref<1x17x32xf32, #tpu.memory_space<vmem>>, vector<1x17x32xf32>,
    return
  }
  func.func @transform_0(%arg0: i32) -> (i32, i32, i32) {
    %c0_i32 = arith.constant 0 : i32
    %c0_i32_0 = arith.constant 0 : i32
    %c0_i32_1 = arith.constant 0 : i32
    return %arg0, %c0_i32, %c0_i32_0 : i32, i32, i32
  }
  func.func @transform_1(%arg0: i32) -> (i32, i32, i32) {
    %c0_i32 = arith.constant 0 : i32
    %c0_i32_0 = arith.constant 0 : i32
    %c0_i32_1 = arith.constant 0 : i32
    %c0_i32_2 = arith.constant 0 : i32
    return %c0_i32, %c0_i32_0, %c0_i32_1 : i32, i32, i32
  }
  func.func @transform_2(%arg0: i32) -> (i32, i32, i32) {
    %c0_i32 = arith.constant 0 : i32
    %c0_i32_0 = arith.constant 0 : i32
    %c0_i32_1 = arith.constant 0 : i32
    %c0_i32_2 = arith.constant 0 : i32
    return %c0_i32, %c0_i32_0, %c0_i32_1 : i32, i32, i32
  }
  func.func @transform_3(%arg0: i32) -> (i32, i32, i32) {
    %c0_i32 = arith.constant 0 : i32
    %c0_i32_0 = arith.constant 0 : i32
    %c0_i32_1 = arith.constant 0 : i32
    %c0_i32_2 = arith.constant 0 : i32
    return %c0_i32, %c0_i32_0, %c0_i32_1 : i32, i32, i32
  }
  func.func @transform_4(%arg0: i32) -> (i32, i32, i32) {
    %c0_i32 = arith.constant 0 : i32
    %c0_i32_0 = arith.constant 0 : i32
    %c0_i32_1 = arith.constant 0 : i32
    %c0_i32_2 = arith.constant 0 : i32
    return %c0_i32, %c0_i32_0, %c0_i32_1 : i32, i32, i32
  }
  func.func @transform_5(%arg0: i32) -> (i32, i32, i32) {
    %c0_i32 = arith.constant 0 : i32
    %c0_i32_0 = arith.constant 0 : i32
    %c0_i32_1 = arith.constant 0 : i32
    %c0_i32_2 = arith.constant 0 : i32
    return %c0_i32, %c0_i32_0, %c0_i32_1 : i32, i32, i32
  }
  func.func @transform_6(%arg0: i32) -> (i32, i32, i32) {
    %c0_i32 = arith.constant 0 : i32
    %c0_i32_0 = arith.constant 0 : i32
    %c0_i32_1 = arith.constant 0 : i32
    %c0_i32_2 = arith.constant 0 : i32
    return %c0_i32, %c0_i32_0, %c0_i32_1 : i32, i32, i32
  }
  func.func @transform_7(%arg0: i32) -> (i32, i32, i32) {
    %c0_i32 = arith.constant 0 : i32
    %c0_i32_0 = arith.constant 0 : i32
    %c0_i32_1 = arith.constant 0 : i32
    %c0_i32_2 = arith.constant 0 : i32
    return %c0_i32, %c0_i32_0, %c0_i32_1 : i32, i32, i32
  }
  func.func @transform_8(%arg0: i32) -> (i32, i32) {
    %c0_i32 = arith.constant 0 : i32
    %c0_i32_0 = arith.constant 0 : i32
    %c0_i32_1 = arith.constant 0 : i32
    return %c0_i32, %c0_i32_0 : i32, i32
  }
  func.func @transform_9(%arg0: i32) -> (i32, i32) {
    %c0_i32 = arith.constant 0 : i32
    %c0_i32_0 = arith.constant 0 : i32
    %c0_i32_1 = arith.constant 0 : i32
    return %c0_i32, %c0_i32_0 : i32, i32
  }
  func.func @transform_10(%arg0: i32) -> (i32, i32) {
    %c0_i32 = arith.constant 0 : i32
    %c0_i32_0 = arith.constant 0 : i32
    %c0_i32_1 = arith.constant 0 : i32
    return %c0_i32, %c0_i32_0 : i32, i32
  }
  func.func @transform_11(%arg0: i32) -> (i32, i32) {
    %c0_i32 = arith.constant 0 : i32
    %c0_i32_0 = arith.constant 0 : i32
    %c0_i32_1 = arith.constant 0 : i32
    return %c0_i32, %c0_i32_0 : i32, i32
  }
  func.func @transform_12(%arg0: i32) -> (i32, i32, i32) {
    %c0_i32 = arith.constant 0 : i32
    %c0_i32_0 = arith.constant 0 : i32
    %c0_i32_1 = arith.constant 0 : i32
    return %arg0, %c0_i32, %c0_i32_0 : i32, i32, i32
  }
}

</mosaic_0001>

<bundles_post_ra>
// kernel: tpu_custom_call.1
= control target key start
LH: loop header
LB: loop body
LE: loop exit
PB: predicated region body
PF: predicated region fallthrough
CT: control target
= control target key end

     0   :  { %s2622_s21 = smov 0   ;;  %s3104_s0 = inlined_call_operand.vmem [shape: f32[2,17,32], index: 0, kind: input, shape index: {}]   ;;  %s3105_s1 = inlined_call_operand.vmem [shape: f32[2,32,16], index: 1, kind: input, shape index: {}]   ;;  %s3106_s2 = inlined_call_operand.vmem [shape: f32[2,1,16], index: 2, kind: input, shape index: {}]   ;;  %s3107_s3 = inlined_call_operand.vmem [shape: f32[2,32,16], index: 3, kind: input, shape index: {}]   ;;  %s3108_s4 = inlined_call_operand.vmem [shape: f32[2,1,16], index: 4, kind: input, shape index: {}]   ;;  %s3109_s5 = inlined_call_operand.vmem [shape: f32[2,32,16], index: 5, kind: input, shape index: {}]   ;;  %s3110_s6 = inlined_call_operand.vmem [shape: f32[2,1,16], index: 6, kind: input, shape index: {}]   ;;  %s3111_s7 = inlined_call_operand.vmem [shape: f32[2,16,32], index: 7, kind: input, shape index: {}]   ;;  %s3112_s8 = inlined_call_operand.vmem [shape: f32[1,32], index: 8, kind: input, shape index: {}]   ;;  %s3113_s9 = inlined_call_operand.vmem [shape: f32[17,16], index: 9, kind: input, shape index: {}]   ;;  %s3114_s10 = inlined_call_operand.vmem [shape: f32[17,16], index: 10, kind: input, shape index: {}]   ;;  %s3115_s11 = inlined_call_operand.vmem [shape: f32[16,16], index: 11, kind: input, shape index: {}]   ;;  %s3116_s12 = inlined_call_operand.vmem [shape: f32[2,17,32], index: 12, kind: output, shape index: {}]  }
   0x1 LB: > { %s2087_s22 = sadd.s32 4294967295, %s2553_s21   ;;  %p2091_p0 = scmp.ge.s32.totalorder %s2553_s21, 1  ;;  %s2553_s21 = sphi %s2622_s21, %s22_s21  }
   0x2   : > { %p362_p1 = scmp.lt.s32.totalorder %s2553_s21, 3 }
   0x4   : > { %p363_p2 = pnand %p2091_p0, %p362_p1 }
   0x5   : > { %p404_p3 = scmp.lt.s32.totalorder (!%p363_p2), %s2087_s22, 1 }
   0x6   : > { %366 = sbr.rel (%p363_p2) target bundleno = 2268 (0x8dc), region = 68 }
   0xb   : > { %v428_v0 = vld [vmem:[%s3105_s1 + $0x18] sm:$0xff]  ;;  %v2555_v2 = vmov 0.0   ;;  %v427_v3 = vld [vmem:[%s3105_s1 + $0x10] sm:$0xff]  ;;  %s3118_s22 = smov (!%p404_p3, %s2087_s22), 1  ;;  %v426_v5 = vld [vmem:[%s3105_s1 + $0x8] sm:$0xff]  ;;  %vm436_vm0 = vcmask 261120  }
   0xc   : > { %v529_v1 = vld [vmem:[%s3107_s3 + $0x18] sm:$0xff]  ;;  %2272 = vmatprep.subr.mxu0 %v2555_v2  ;;  %2289 = vmatprep.subr.mxu1 %v2555_v2  ;;  %v528_v4 = vld [vmem:[%s3107_s3 + $0x10] sm:$0xff]  ;;  %v527_v6 = vld [vmem:[%s3107_s3 + $0x8] sm:$0xff]  ;;  %s2512_s17 = smul.u32 24, %s3118_s22  ;;  %vm2556_vm1 = vmmov 0   ;;  %vm708_vm2 = vcmask 130048  }
   0xd   : > { %2273 = vmatpush3.msra.mxu0 %v428_v0  ;;  %2290 = vmatpush3.msra.mxu1 %v529_v1  ;;  %v425_v7 = vld [vmem:[%s3105_s1] sm:$0xff]  ;;  %v620_v10 = vld [vmem:[%s3109_s5 + $0x18] sm:$0xff]  ;;  %v2686_v11 = vld [vmem:[%s3115_s11 + $0x8] sm:$0xff]  ;;  %vm1050_vm3 = vcmask 1040384   ;;  %vm1006_vm4 = vcmask 138240   ;;  %vm1013_vm5 = vcmask 131072  }
   0xe   : > { %2274 = vmatprep.subr.mxu0 %v2555_v2  ;;  %2291 = vmatprep.subr.mxu1 %v2555_v2  ;;  %v526_v8 = vld [vmem:[%s3107_s3] sm:$0xff]  ;;  %s408_s26 = scalar_lea.vmem %s3104_s0, %s2512_s17  ;;  %v619_v13 = vld [vmem:[%s3109_s5 + $0x10] sm:$0xff]  ;;  %v618_v16 = vld [vmem:[%s3109_s5 + $0x8] sm:$0xff]  ;;  %s413_s24 = scalar_lea.vmem %s3116_s12, %s2512_s17  ;;  %vm2030_vm6 = vcmask 253952  }
   0xf   : > { %2275 = vmatpush3.msra.mxu0 %v427_v3  ;;  %2292 = vmatpush3.msra.mxu1 %v528_v4  ;;  %v2670_v9 = vld [vmem:[%s408_s26] sm:$0xff]  ;;  %v2692_v12 = vld [vmem:[%s408_s26 + $0x8] sm:$0xff]  ;;  %v2713_v15 = vld [vmem:[%s408_s26 + $0x10] sm:$0x1] }
  0x10   : > { %2276 = vmatprep.subr.mxu0 %v2555_v2  ;;  %2293 = vmatprep.subr.mxu1 %v2555_v2  ;;  %v2707_v14 = vld [vmem:[%s3115_s11] sm:$0xff]  ;;  %v2798_v54 = vld [vmem:[%s3113_s9 + $0x10] sm:$0x1]  ;;  %v2808_v58 = vld [vmem:[%s3114_s10 + $0x8] sm:$0xff] }
  0x11   : > { %2277 = vmatpush3.msra.mxu0 %v426_v5  ;;  %2294 = vmatpush3.msra.mxu1 %v527_v6  ;;  %v617_v17 = vld [vmem:[%s3109_s5] sm:$0xff]  ;;  %v2803_v57 = vld [vmem:[%s3114_s10 + $0x10] sm:$0x1]  ;;  %v2815_v63 = vld [vmem:[%s3113_s9 + $0x8] sm:$0xff] }
  0x12   : > { %2278 = vmatprep.subr.mxu0 %v2555_v2  ;;  %2295 = vmatprep.subr.mxu1 %v2555_v2  ;;  %v2094_v18 = vld [vmem:[%s3106_s2] ss:$0 sm:$0xff] }
  0x13   : > { %2279 = vmatpush3.msra.mxu0 %v425_v7  ;;  %2280 = vmatprep.mubr.msk.f32.mxu0 %vm2556_vm1, %v2555_v2  ;;  %v2098_v19 = vld [vmem:[%s3108_s4] ss:$0 sm:$0xff] }
  0x14   : > { %2296 = vmatpush3.msra.mxu1 %v526_v8  ;;  %2297 = vmatprep.mubr.msk.f32.mxu1 %vm2556_vm1, %v2555_v2  ;;  %v2102_v41 = vld [vmem:[%s3110_s6] ss:$0 sm:$0xff] }
  0x15   : > { %2281 = vmatmul.mubr.msk.f32.vlgmr.msra.gmra.mxu0 %vm436_vm0, %v2670_v9  ;;  %2298 = vmatmul.mubr.msk.f32.vlgmr.msra.gmra.mxu1 %vm436_vm0, %v2670_v9  ;;  %v2821_v5 = vld [vmem:[%s3114_s10] sm:$0xff] }
  0x16   : > { %2283 = vmatprep.mubr.msk.f32.mxu0 %vm2556_vm1, %v2555_v2  ;;  %2300 = vmatprep.mubr.msk.f32.mxu1 %vm2556_vm1, %v2555_v2  ;;  %v2828_v7 = vld [vmem:[%s3113_s9] sm:$0xff] }
  0x17   : > { %2306 = vmatprep.subr.mxu0 %v2555_v2  ;;  %2323 = vmatprep.subr.mxu1 %v2555_v2 }
  0x18   : > { %2307 = vmatpush3.msra.mxu0 %v620_v10  ;;  %2324 = vmatpush3.msra.mxu1 %v2686_v11 }
  0x19   : > { %2284 = vmatmul.mubr.msk.f32.gmra.mxu0 %vm436_vm0, %v2692_v12  ;;  %2301 = vmatmul.mubr.msk.f32.gmra.mxu1 %vm436_vm0, %v2692_v12 }
  0x1a   : > { %2286 = vmatprep.mubr.msk.f32.mxu0 %vm2556_vm1, %v2555_v2  ;;  %2303 = vmatprep.mubr.msk.f32.mxu1 %vm2556_vm1, %v2555_v2 }
  0x1b   : > { %2308 = vmatprep.subr.mxu0 %v2555_v2  ;;  %2325 = vmatprep.subr.mxu1 %v2555_v2 }
  0x1c   : > { %2309 = vmatpush3.msra.mxu0 %v619_v13  ;;  %2326 = vmatpush3.msra.mxu1 %v2707_v14 }
  0x1d   : > { %2287 = vmatmul.mubr.msk.f32.gmra.mxu0 %vm436_vm0, %v2713_v15  ;;  %2304 = vmatmul.mubr.msk.f32.gmra.mxu1 %vm436_vm0, %v2713_v15 }
  0x1e   : > { %2310 = vmatprep.subr.mxu0 %v2555_v2  ;;  %2314 = vmatprep.mubr.msk.f32.mxu0 %vm2556_vm1, %v2555_v2 }
  0x1f   : > { %2311 = vmatpush3.msra.mxu0 %v618_v16  ;;  %2327 = vmatprep.mubr.msk.f32.mxu1 %vm2556_vm1, %v2555_v2 }
  0x20   : > { %2312 = vmatprep.subr.mxu0 %v2555_v2  ;;  %2349 = vmatprep.subr.mxu1 %v2555_v2 }
  0x21   : > { %2313 = vmatpush3.msra.mxu0 %v617_v17 }
  0x22   : > { %2315 = vmatmul.mubr.msk.f32.vlgmr.msra.gmra.mxu0 %vm436_vm0, %v2670_v9  ;;  %2336 = vmatprep.subr.mxu0 %v2555_v2 }
  0x23   : > { %2317 = vmatprep.mubr.msk.f32.mxu0 %vm2556_vm1, %v2555_v2  ;;  %2337 = vmatpush3.msra.mxu0 %v2686_v11 }
  0x24   : > { %2338 = vmatprep.subr.mxu0 %v2555_v2 }
  0x25   : > { %2339 = vmatpush3.msra.mxu0 %v2707_v14 }
  0x26   : > { %2318 = vmatmul.mubr.msk.f32.gmra.mxu0 %vm436_vm0, %v2692_v12  ;;  %2364 = vmatprep.subr.mxu0 %v2555_v2 }
  0x27   : > { %2320 = vmatprep.mubr.msk.f32.mxu0 %vm2556_vm1, %v2555_v2 }
  0x2a   : > { %2321 = vmatmul.mubr.msk.f32.gmra.mxu0 %vm436_vm0, %v2713_v15 }
  0x2b   : > { %2340 = vmatprep.mubr.msk.f32.mxu0 %vm2556_vm1, %v2555_v2 }
  0xd5   : > { %v512_v20 = vpop.f32.mrf.mxu0  ;;  %v603_v21 = vpop.f32.mrf.mxu1 }
  0xd6   : > { %v2758_v22 = vadd.f32 %v2094_v18, %v512_v20  ;;  %v2760_v23 = vadd.f32 %v2098_v19, %v603_v21 }
  0xd7   : > { %v2282_v24 = vpop.f32.mrf.mxu0  ;;  %v2299_v25 = vpop.f32.mrf.mxu1 }
  0xd8   : > { %2328 = vmatmul.mubr.msk.f32.vlgmr.msra.gmra.mxu1 %vm708_vm2, %v2758_v22  ;;  %2341 = vmatmul.mubr.msk.f32.vlgmr.msra.gmra.mxu0 %vm708_vm2, %v2760_v23  ;;  %v896_v13 = vmul.f32 %v2760_v23, %v2828_v7 }
  0xd9   : > { %v517_v26 = vpop.f32.mrf.mxu0  ;;  %v608_v27 = vpop.f32.mrf.mxu1  ;;  %2330 = vmatprep.mubr.msk.f32.mxu1 %vm2556_vm1, %v2555_v2  ;;  %2343 = vmatprep.mubr.msk.f32.mxu0 %vm2556_vm1, %v2555_v2 }
  0xda   : > { %v2770_v28 = vadd.f32 %v2094_v18, %v517_v26  ;;  %v609_v29 = vadd.f32 %v2098_v19, %v608_v27 }
  0xdb   : > { %v2285_v30 = vpop.f32.mrf.mxu0  ;;  %v2302_v31 = vpop.f32.mrf.mxu1 }
  0xdc   : > { %2331 = vmatmul.mubr.msk.f32.gmra.mxu1 %vm708_vm2, %v2770_v28  ;;  %2344 = vmatmul.mubr.msk.f32.gmra.mxu0 %vm708_vm2, %v609_v29  ;;  %v897_v6 = vmul.f32 %v609_v29, %v2815_v63  ;;  %v799_v21 = vmul.f32 %v2770_v28, %v2815_v63 }
  0xdd   : > { %v522_v32 = vpop.f32.mrf.mxu0  ;;  %v613_v33 = vpop.f32.mrf.mxu1  ;;  %2333 = vmatprep.mubr.msk.f32.mxu1 %vm2556_vm1, %v2555_v2  ;;  %2346 = vmatprep.mubr.msk.f32.mxu0 %vm2556_vm1, %v2555_v2 }
  0xde   : > { %v2779_v34 = vadd.f32 %v2094_v18, %v522_v32  ;;  %v614_v35 = vadd.f32 %v2098_v19, %v613_v33  ;;  %v798_v18 = vmul.f32 %v2758_v22, %v2828_v7 }
  0xdf   : > { %v2305_v36 = vpop.f32.mrf.mxu1  ;;  %v2288_v37 = vpop.f32.mrf.mxu0 }
  0xe0   : > { %2334 = vmatmul.mubr.msk.f32.gmra.mxu1 %vm708_vm2, %v2779_v34  ;;  %2347 = vmatmul.mubr.msk.f32.gmra.mxu0 %vm708_vm2, %v614_v35  ;;  %v898_v61 = vmul.f32 %v614_v35, %v2798_v54  ;;  %v800_v22 = vmul.f32 %v2779_v34, %v2798_v54 }
  0xe1   : > { %2355 = vmatprep.mubr.msk.f32.mxu1 %vm2556_vm1, %v2555_v2  ;;  %2370 = vmatprep.mubr.msk.f32.mxu0 %vm2556_vm1, %v2555_v2 }
  0xe2   : > { %v694_v38 = vpop.f32.mrf.mxu0 }
  0xe3   : > { %v695_v47 = vadd.f32 %v2102_v41, %v694_v38  ;;  %v2125_v38 = vld [vmem:[%s3105_s1 + $0x38] sm:$0xff] }
  0xe4   : > { %v2316_v39 = vpop.f32.mrf.mxu0 }
  0xe5   : > { %v2124_v39 = vld [vmem:[%s3105_s1 + $0x30] sm:$0xff] }
  0xe6   : > { %v699_v40 = vpop.f32.mrf.mxu0 }
  0xe7   : > { %v700_v44 = vadd.f32 %v2102_v41, %v699_v40  ;;  %v2123_v40 = vld [vmem:[%s3105_s1 + $0x28] sm:$0xff] }
  0xe8   : > { %v2319_v42 = vpop.f32.mrf.mxu0 }
  0xea   : > { %v704_v43 = vpop.f32.mrf.mxu0 }
  0xeb   : > { %v705_v45 = vadd.f32 %v2102_v41, %v704_v43  ;;  %v2122_v41 = vld [vmem:[%s3105_s1 + $0x20] sm:$0xff] }
  0xec   : > { %v2322_v46 = vpop.f32.mrf.mxu0 }
  0xed   : > { %2365 = vmatpush3.msk.msra.mxu0 %vm1050_vm3, %v705_v45 }
  0xee   : > { %2366 = vmatprep.subr.mxu0 %v2555_v2 }
  0xef   : > { %2367 = vmatpush3.msra.mxu0 %v700_v44 }
  0xf0   : > { %2368 = vmatprep.subr.mxu0 %v2555_v2 }
  0xf1   : > { %2369 = vmatpush3.msra.mxu0 %v695_v47 }
  0xf2   : > { %2396 = vmatprep.subr.mxu0 %v2555_v2 }
 0x198   : > { %v784_v48 = vpop.f32.mrf.mxu1  ;;  %v882_v49 = vpop.f32.mrf.mxu0 }
 0x199   : > { %v899_v8 = vmul.f32 %v882_v49, %v2821_v5  ;;  %v801_v16 = vmul.f32 %v784_v48, %v2821_v5 }
 0x19a   : > { %v2329_v50 = vpop.f32.mrf.mxu1  ;;  %v2342_v51 = vpop.f32.mrf.mxu0 }
 0x19b   : > { %v902_v17 = vadd.f32 %v899_v8, %v896_v13  ;;  %v804_v19 = vadd.f32 %v801_v16, %v798_v18 }
 0x19c   : > { %v789_v52 = vpop.f32.mrf.mxu1  ;;  %v887_v53 = vpop.f32.mrf.mxu0 }
 0x19d   : > { %v900_v3 = vmul.f32 %v887_v53, %v2808_v58  ;;  %v802_v20 = vmul.f32 %v789_v52, %v2808_v58 }
 0x19e   : > { %v2332_v55 = vpop.f32.mrf.mxu1  ;;  %v2345_v56 = vpop.f32.mrf.mxu0 }
 0x19f   : > { %v903_v10 = vadd.f32 %v900_v3, %v897_v6  ;;  %v805_v23 = vadd.f32 %v802_v20, %v799_v21  ;;  %v2141_v3 = vld [vmem:[%s3109_s5 + $0x28] sm:$0xff]  ;;  %v2140_v6 = vld [vmem:[%s3109_s5 + $0x20] sm:$0xff]  ;;  %v2134_v20 = vld [vmem:[%s3107_s3 + $0x38] sm:$0xff] }
 0x1a0   : > { %v794_v59 = vpop.f32.mrf.mxu1  ;;  %v892_v60 = vpop.f32.mrf.mxu0  ;;  %v2133_v21 = vld [vmem:[%s3107_s3 + $0x30] sm:$0xff] }
 0x1a1   : > { %v901_v62 = vmul.f32 %v892_v60, %v2803_v57  ;;  %v803_v24 = vmul.f32 %v794_v59, %v2803_v57 }
 0x1a2   : > { %v2348_v0 = vpop.f32.mrf.mxu0  ;;  %v2335_v1 = vpop.f32.mrf.mxu1 }
 0x1a3   : > { %v904_v4 = vadd.f32 %v901_v62, %v898_v61  ;;  %v806_v25 = vadd.f32 %v803_v24, %v800_v22  ;;  %v2143_v62 = vld [vmem:[%s3109_s5 + $0x38] sm:$0xff]  ;;  %v2142_v0 = vld [vmem:[%s3109_s5 + $0x30] sm:$0xff]  ;;  %v2132_v22 = vld [vmem:[%s3107_s3 + $0x28] sm:$0xff] }
 0x1a5   : > { %2350 = vmatpush3.xpose.msk.msra.mxu1 %vm708_vm2, %v904_v4 }
 0x1a6   : > { %2351 = vmatprep.subr.mxu1 %v2555_v2 }
 0x1a9   : > { %2352 = vmatpush3.xpose.msk.msra.mxu1 %vm708_vm2, %v903_v10 }
 0x1aa   : > { %2353 = vmatprep.subr.mxu1 %v2555_v2 }
 0x1ad   : > { %2354 = vmatpush3.xpose.msk.msra.mxu1 %vm708_vm2, %v902_v17 }
 0x1ae   : > { %2379 = vmatprep.subr.mxu1 %v2555_v2 }
 0x1b0   : > { %2356 = vmatmul.mubr.msk.f32.vlgmr.msra.gmra.mxu1 %vm708_vm2, %v804_v19 }
 0x1b1   : > { %2358 = vmatprep.mubr.msk.f32.mxu1 %vm2556_vm1, %v2555_v2  ;;  %2380 = vmatpush3.msra.mxu1 %v2125_v38  ;;  %v2145_v38 = vld [vmem:[%s3110_s6 + $0x1] ss:$0 sm:$0xff] }
 0x1b2   : > { %2381 = vmatprep.subr.mxu1 %v2555_v2 }
 0x1b3   : > { %2382 = vmatpush3.msra.mxu1 %v2124_v39 }
 0x1b4   : > { %2359 = vmatmul.mubr.msk.f32.gmra.mxu1 %vm708_vm2, %v805_v23  ;;  %2383 = vmatprep.subr.mxu1 %v2555_v2 }
 0x1b5   : > { %2361 = vmatprep.mubr.msk.f32.mxu1 %vm2556_vm1, %v2555_v2  ;;  %2384 = vmatpush3.msra.mxu1 %v2123_v40  ;;  %v2136_v40 = vld [vmem:[%s3108_s4 + $0x1] ss:$0 sm:$0xff] }
 0x1b6   : > { %2385 = vmatprep.subr.mxu1 %v2555_v2 }
 0x1b7   : > { %2386 = vmatpush3.msra.mxu1 %v2122_v41 }
 0x1b8   : > { %2362 = vmatmul.mubr.msk.f32.gmra.mxu1 %vm708_vm2, %v806_v25  ;;  %2413 = vmatprep.subr.mxu1 %v2555_v2  ;;  %v2131_v25 = vld [vmem:[%s3107_s3 + $0x20] sm:$0xff] }
 0x1b9   : > { %2387 = vmatprep.mubr.msk.f32.mxu1 %vm2556_vm1, %v2555_v2 }
 0x1bc   : > { %2388 = vmatmul.mubr.msk.f32.vlgmr.msra.gmra.mxu1 %vm436_vm0, %v2670_v9 }
 0x1bd   : > { %2390 = vmatprep.mubr.msk.f32.mxu1 %vm2556_vm1, %v2555_v2  ;;  %2414 = vmatpush3.msra.mxu1 %v2143_v62 }
 0x1be   : > { %2415 = vmatprep.subr.mxu1 %v2555_v2 }
 0x1bf   : > { %2416 = vmatpush3.msra.mxu1 %v2142_v0 }
 0x1c0   : > { %2391 = vmatmul.mubr.msk.f32.gmra.mxu1 %vm436_vm0, %v2692_v12  ;;  %2417 = vmatprep.subr.mxu1 %v2555_v2 }
 0x1c1   : > { %2393 = vmatprep.mubr.msk.f32.mxu1 %vm2556_vm1, %v2555_v2  ;;  %2418 = vmatpush3.msra.mxu1 %v2141_v3 }
 0x1c2   : > { %2419 = vmatprep.subr.mxu1 %v2555_v2 }
 0x1c3   : > { %2420 = vmatpush3.msra.mxu1 %v2140_v6 }
 0x1c4   : > { %2394 = vmatmul.mubr.msk.f32.gmra.mxu1 %vm436_vm0, %v2713_v15  ;;  %2443 = vmatprep.subr.mxu1 %v2555_v2 }
 0x1c5   : > { %2421 = vmatprep.mubr.msk.f32.mxu1 %vm2556_vm1, %v2555_v2 }
 0x1c8   : > { %2422 = vmatmul.mubr.msk.f32.vlgmr.msra.gmra.mxu1 %vm436_vm0, %v2670_v9 }
 0x1c9   : > { %2424 = vmatprep.mubr.msk.f32.mxu1 %vm2556_vm1, %v2555_v2  ;;  %2444 = vmatpush3.msra.mxu1 %v2686_v11 }
 0x1ca   : > { %2445 = vmatprep.subr.mxu1 %v2555_v2 }
 0x1cb   : > { %2446 = vmatpush3.msra.mxu1 %v2707_v14 }
 0x1cc   : > { %2425 = vmatmul.mubr.msk.f32.gmra.mxu1 %vm436_vm0, %v2692_v12  ;;  %2471 = vmatprep.subr.mxu1 %v2555_v2 }
 0x1cd   : > { %2427 = vmatprep.mubr.msk.f32.mxu1 %vm2556_vm1, %v2555_v2 }
 0x1d0   : > { %2428 = vmatmul.mubr.msk.f32.gmra.mxu1 %vm436_vm0, %v2713_v15 }
 0x1d1   : > { %2447 = vmatprep.mubr.msk.f32.mxu1 %vm2556_vm1, %v2555_v2 }
 0x270   : > { %v989_v26 = vpop.f32.mrf.mxu1 }
 0x271   : > { %v1003_v27 = vmul.f32 0.25, %v989_v26 }
 0x272   : > { %v2357_v28 = vpop.f32.mrf.mxu1 }
 0x273   : > { %v1007_v29 = vsel %vm1006_vm4, %v1003_v27, -inf }
 0x274   : > { %1008 = vmax.xlane.f32.xlu0 %v1007_v29  ;;  %v994_v30 = vpop.f32.mrf.mxu1 }
 0x275   : > { %v1004_v31 = vmul.f32 0.25, %v994_v30 }
 0x276   : > { %v2360_v32 = vpop.f32.mrf.mxu1 }
 0x277   : > { %v1010_v33 = vsel %vm1006_vm4, %v1004_v31, -inf }
 0x278   : > { %1011 = vmax.xlane.f32.xlu0 %v1010_v33  ;;  %v999_v34 = vpop.f32.mrf.mxu1 }
 0x279   : > { %v1005_v35 = vmul.f32 0.25, %v999_v34 }
 0x27a   : > { %v2363_v36 = vpop.f32.mrf.mxu1 }
 0x27b   : > { %v1014_v37 = vsel %vm1013_vm5, %v1005_v35, -inf }
 0x27c   : > { %1015 = vmax.xlane.f32.xlu1 %v1014_v37  ;;  %v2890_v60 = vpop.f32.mrf.mxu1 }
 0x27e   : > { %v2389_v61 = vpop.f32.mrf.mxu1 }
 0x280   : > { %v2898_v1 = vpop.f32.mrf.mxu1 }
 0x282   : > { %v2392_v4 = vpop.f32.mrf.mxu1 }
 0x284   : > { %v1225_v8 = vpop.f32.mrf.mxu1 }
 0x286   : > { %v2395_v10 = vpop.f32.mrf.mxu1 }
 0x2fd   : > { %v1009_v42 = vpop.xlane.xlu0 %1008 }
 0x2fe   : > { %v1017_v43 = vsub.f32 %v1003_v27, %v1009_v42 }
 0x300   : > { %v1020_v44 = vmul.f32 1.442695, %v1017_v43 }
 0x301   : > { %v1012_v45 = vpop.xlane.xlu0 %1011 }
 0x302   : > { %2523 = vpow2.f32 %v1020_v44  ;;  %v1018_v46 = vsub.f32 %v1004_v31, %v1012_v45 }
 0x304   : > { %v1022_v47 = vmul.f32 1.442695, %v1018_v46 }
 0x305   : > { %v1016_v48 = vpop.xlane.xlu1 %1015 }
 0x306   : > { %2525 = vpow2.f32 %v1022_v47  ;;  %v1019_v49 = vsub.f32 %v1005_v35, %v1016_v48 }
 0x308   : > { %v1024_v50 = vmul.f32 1.442695, %v1019_v49 }
 0x30a   : > { %2527 = vpow2.f32 %v1024_v50 }
 0x30f   : > { %v2524_v51 = vpop.eup %2523 }
 0x310   : > { %v1026_v52 = vsel %vm1006_vm4, %v2524_v51, 0.0 }
 0x311   : > { %1027 = vadd.xlane.f32.xlu1 %v1026_v52 }
 0x313   : > { %v2526_v53 = vpop.eup %2525 }
 0x314   : > { %v1029_v55 = vsel %vm1006_vm4, %v2526_v53, 0.0 }
 0x315   : > { %1030 = vadd.xlane.f32.xlu0 %v1029_v55 }
 0x317   : > { %v2528_v56 = vpop.eup %2527 }
 0x318   : > { %v1032_v59 = vsel %vm1013_vm5, %v2528_v56, 0.0 }
 0x319   : > { %1033 = vadd.xlane.f32.xlu1 %v1032_v59 }
 0x39a   : > { %v1028_v13 = vpop.xlane.xlu1 %1027 }
 0x39b   : > { %2529 = vrcp.f32 %v1028_v13 }
 0x39e   : > { %v1031_v16 = vpop.xlane.xlu0 %1030 }
 0x39f   : > { %2531 = vrcp.f32 %v1031_v16 }
 0x3a2   : > { %v1034_v17 = vpop.xlane.xlu1 %1033 }
 0x3a3   : > { %2533 = vrcp.f32 %v1034_v17 }
 0x3a8   : > { %v2530_v18 = vpop.eup %2529 }
 0x3a9   : > { %v1038_v19 = vmul.f32 %v2530_v18, %v2524_v51 }
 0x3ab   : > { %2371 = vmatmul.mubr.msk.f32.vlgmr.msra.gmra.mxu0 %vm1006_vm4, %v1038_v19 }
 0x3ac   : > { %v2532_v23 = vpop.eup %2531  ;;  %2397 = vmatpush3.msra.mxu0 %v2134_v20  ;;  %2373 = vmatprep.mubr.msk.f32.mxu0 %vm2556_vm1, %v2555_v2 }
 0x3ad   : > { %2398 = vmatprep.subr.mxu0 %v2555_v2  ;;  %v1039_v24 = vmul.f32 %v2532_v23, %v2526_v53 }
 0x3ae   : > { %2399 = vmatpush3.msra.mxu0 %v2133_v21 }
 0x3af   : > { %2374 = vmatmul.mubr.msk.f32.gmra.mxu0 %vm1006_vm4, %v1039_v24  ;;  %2400 = vmatprep.subr.mxu0 %v2555_v2 }
 0x3b0   : > { %v2534_v26 = vpop.eup %2533  ;;  %2376 = vmatprep.mubr.msk.f32.mxu0 %vm2556_vm1, %v2555_v2  ;;  %2401 = vmatpush3.msra.mxu0 %v2132_v22 }
 0x3b1   : > { %v1040_v27 = vmul.f32 %v2534_v26, %v2528_v56  ;;  %2402 = vmatprep.subr.mxu0 %v2555_v2 }
 0x3b2   : > { %2403 = vmatpush3.msra.mxu0 %v2131_v25 }
 0x3b3   : > { %2377 = vmatmul.mubr.msk.f32.gmra.mxu0 %vm1006_vm4, %v1040_v27  ;;  %2430 = vmatprep.subr.mxu0 %v2555_v2 }
 0x3b4   : > { %2404 = vmatprep.mubr.msk.f32.mxu0 %vm2556_vm1, %v2555_v2 }
 0x3b7   : > { %2405 = vmatmul.mubr.msk.f32.vlgmr.msra.gmra.mxu0 %vm436_vm0, %v2670_v9  ;;  %v2127_v9 = vld [vmem:[%s3106_s2 + $0x1] ss:$0 sm:$0xff] }
 0x3b8   : > { %2407 = vmatprep.mubr.msk.f32.mxu0 %vm2556_vm1, %v2555_v2  ;;  %2431 = vmatpush3.msra.mxu0 %v2686_v11  ;;  %v2969_v11 = vadd.f32 %v2127_v9, %v2890_v60 }
 0x3b9   : > { %2432 = vmatprep.subr.mxu0 %v2555_v2 }
 0x3ba   : > { %2433 = vmatpush3.msra.mxu0 %v2707_v14  ;;  %v2982_v14 = vadd.f32 %v2127_v9, %v1225_v8  ;;  %v1504_v21 = vmul.f32 %v2969_v11, %v2828_v7 }
 0x3bb   : > { %2408 = vmatmul.mubr.msk.f32.gmra.mxu0 %vm436_vm0, %v2692_v12  ;;  %2456 = vmatprep.subr.mxu0 %v2555_v2  ;;  %v2976_v12 = vadd.f32 %v2127_v9, %v2898_v1 }
 0x3bc   : > { %2410 = vmatprep.mubr.msk.f32.mxu0 %vm2556_vm1, %v2555_v2 }
 0x3bd   : > { %v1505_v22 = vmul.f32 %v2976_v12, %v2815_v63 }
 0x3bf   : > { %2411 = vmatmul.mubr.msk.f32.gmra.mxu0 %vm436_vm0, %v2713_v15  ;;  %v1401_v15 = vpop.f32.mrf.mxu1 }
 0x3c0   : > { %2434 = vmatprep.mubr.msk.f32.mxu0 %vm2556_vm1, %v2555_v2  ;;  %v1402_v47 = vadd.f32 %v2145_v38, %v1401_v15 }
 0x3c1   : > { %v2423_v28 = vpop.f32.mrf.mxu1 }
 0x3c3   : > { %2435 = vmatmul.mubr.msk.f32.vlgmr.msra.gmra.mxu0 %vm708_vm2, %v2969_v11  ;;  %v1406_v29 = vpop.f32.mrf.mxu1 }
 0x3c4   : > { %2437 = vmatprep.mubr.msk.f32.mxu0 %vm2556_vm1, %v2555_v2  ;;  %v1407_v45 = vadd.f32 %v2145_v38, %v1406_v29 }
 0x3c5   : > { %v2426_v30 = vpop.f32.mrf.mxu1 }
 0x3c7   : > { %2438 = vmatmul.mubr.msk.f32.gmra.mxu0 %vm708_vm2, %v2976_v12  ;;  %v1411_v31 = vpop.f32.mrf.mxu1 }
 0x3c8   : > { %2440 = vmatprep.mubr.msk.f32.mxu0 %vm2556_vm1, %v2555_v2  ;;  %v1412_v42 = vadd.f32 %v2145_v38, %v1411_v31 }
 0x3c9   : > { %v2429_v32 = vpop.f32.mrf.mxu1 }
 0x3cb   : > { %2441 = vmatmul.mubr.msk.f32.gmra.mxu0 %vm708_vm2, %v2982_v14 }
 0x3cc   : > { %2462 = vmatprep.mubr.msk.f32.mxu0 %vm2556_vm1, %v2555_v2 }
 0x46b   : > { %v2990_v33 = vpop.f32.mrf.mxu0 }
 0x46d   : > { %v2372_v34 = vpop.f32.mrf.mxu0 }
 0x46f   : > { %v2992_v35 = vpop.f32.mrf.mxu0 }
 0x471   : > { %v2375_v36 = vpop.f32.mrf.mxu0 }
 0x473   : > { %v2994_v37 = vpop.f32.mrf.mxu0 }
 0x475   : > { %v2378_v39 = vpop.f32.mrf.mxu0 }
 0x477   : > { %v1308_v41 = vpop.f32.mrf.mxu0 }
 0x478   : > { %v1309_v43 = vadd.f32 %v2136_v40, %v1308_v41 }
 0x479   : > { %v2406_v44 = vpop.f32.mrf.mxu0 }
 0x47a   : > { %2448 = vmatmul.mubr.msk.f32.vlgmr.msra.gmra.mxu1 %vm708_vm2, %v1309_v43  ;;  %v1602_v20 = vmul.f32 %v1309_v43, %v2828_v7 }
 0x47b   : > { %v1313_v46 = vpop.f32.mrf.mxu0  ;;  %2450 = vmatprep.mubr.msk.f32.mxu1 %vm2556_vm1, %v2555_v2  ;;  %2472 = vmatpush3.msk.msra.mxu1 %vm1050_vm3, %v1412_v42 }
 0x47c   : > { %v1314_v48 = vadd.f32 %v2136_v40, %v1313_v46  ;;  %2473 = vmatprep.subr.mxu1 %v2555_v2 }
 0x47d   : > { %v2409_v49 = vpop.f32.mrf.mxu0  ;;  %2474 = vmatpush3.msra.mxu1 %v1407_v45 }
 0x47e   : > { %2451 = vmatmul.mubr.msk.f32.gmra.mxu1 %vm708_vm2, %v1314_v48  ;;  %2475 = vmatprep.subr.mxu1 %v2555_v2  ;;  %v1603_v17 = vmul.f32 %v1314_v48, %v2815_v63 }
 0x47f   : > { %v1318_v50 = vpop.f32.mrf.mxu0  ;;  %2453 = vmatprep.mubr.msk.f32.mxu1 %vm2556_vm1, %v2555_v2  ;;  %2476 = vmatpush3.msra.mxu1 %v1402_v47 }
 0x480   : > { %v1319_v51 = vadd.f32 %v2136_v40, %v1318_v50  ;;  %2499 = vmatprep.subr.mxu1 %v2555_v2  ;;  %v2166_v50 = vld [vmem:[%s3111_s7 + $0x18] sm:$0xff] }
 0x481   : > { %v2412_v52 = vpop.f32.mrf.mxu0 }
 0x482   : > { %2454 = vmatmul.mubr.msk.f32.gmra.mxu1 %vm708_vm2, %v1319_v51  ;;  %v1604_v6 = vmul.f32 %v1319_v51, %v2798_v54  ;;  %v2165_v51 = vld [vmem:[%s3111_s7 + $0x10] sm:$0xff] }
 0x483   : > { %v1490_v53 = vpop.f32.mrf.mxu0  ;;  %2477 = vmatprep.mubr.msk.f32.mxu1 %vm2556_vm1, %v2555_v2 }
 0x484   : > { %v1507_v23 = vmul.f32 %v1490_v53, %v2821_v5 }
 0x485   : > { %v2436_v55 = vpop.f32.mrf.mxu0 }
 0x486   : > { %v1510_v25 = vadd.f32 %v1507_v23, %v1504_v21  ;;  %v2173_v21 = vld [vmem:[%s3112_s8] ss:$0 sm:$0xff] }
 0x487   : > { %v1495_v56 = vpop.f32.mrf.mxu0 }
 0x488   : > { %v1508_v26 = vmul.f32 %v1495_v56, %v2808_v58 }
 0x489   : > { %v2439_v59 = vpop.f32.mrf.mxu0 }
 0x48a   : > { %v1511_v7 = vadd.f32 %v1508_v26, %v1505_v22 }
 0x48b   : > { %v1500_v60 = vpop.f32.mrf.mxu0 }
 0x48c   : > { %v1509_v27 = vmul.f32 %v1500_v60, %v2803_v57  ;;  %v1135_v60 = vld [vmem:[%s3111_s7 + $0x8] sm:$0xff] }
 0x48d   : > { %v2442_v61 = vpop.f32.mrf.mxu0 }
 0x48e   : > { %v1134_v61 = vld [vmem:[%s3111_s7] sm:$0xff] }
 0x53a   : > { %v1588_v62 = vpop.f32.mrf.mxu1 }
 0x53b   : > { %v1605_v18 = vmul.f32 %v1588_v62, %v2821_v5  ;;  %v1506_v5 = vmul.f32 %v2982_v14, %v2798_v54 }
 0x53c   : > { %v2449_v0 = vpop.f32.mrf.mxu1 }
 0x53d   : > { %v1608_v24 = vadd.f32 %v1605_v18, %v1602_v20  ;;  %v1512_v63 = vadd.f32 %v1509_v27, %v1506_v5 }
 0x53e   : > { %v1593_v1 = vpop.f32.mrf.mxu1 }
 0x53f   : > { %v1606_v13 = vmul.f32 %v1593_v1, %v2808_v58 }
 0x540   : > { %v2452_v3 = vpop.f32.mrf.mxu1 }
 0x541   : > { %v1609_v19 = vadd.f32 %v1606_v13, %v1603_v17 }
 0x542   : > { %v1598_v4 = vpop.f32.mrf.mxu1 }
 0x543   : > { %v1607_v8 = vmul.f32 %v1598_v4, %v2803_v57 }
 0x544   : > { %v2455_v10 = vpop.f32.mrf.mxu1 }
 0x545   : > { %v1610_v16 = vadd.f32 %v1607_v8, %v1604_v6 }
 0x547   : > { %2457 = vmatpush3.xpose.msk.msra.mxu0 %vm708_vm2, %v1610_v16 }
 0x548   : > { %2458 = vmatprep.subr.mxu0 %v2555_v2 }
 0x54b   : > { %2459 = vmatpush3.xpose.msk.msra.mxu0 %vm708_vm2, %v1609_v19 }
 0x54c   : > { %2460 = vmatprep.subr.mxu0 %v2555_v2 }
 0x54f   : > { %2461 = vmatpush3.xpose.msk.msra.mxu0 %vm708_vm2, %v1608_v24 }
 0x550   : > { %2486 = vmatprep.subr.mxu0 %v2555_v2 }
 0x552   : > { %2463 = vmatmul.mubr.msk.f32.vlgmr.msra.gmra.mxu0 %vm708_vm2, %v1510_v25 }
 0x553   : > { %2465 = vmatprep.mubr.msk.f32.mxu0 %vm2556_vm1, %v2555_v2  ;;  %2487 = vmatpush3.msra.mxu0 %v2166_v50 }
 0x554   : > { %2488 = vmatprep.subr.mxu0 %v2555_v2 }
 0x555   : > { %2489 = vmatpush3.msra.mxu0 %v2165_v51 }
 0x556   : > { %2466 = vmatmul.mubr.msk.f32.gmra.mxu0 %vm708_vm2, %v1511_v7 }
 0x557   : > { %2468 = vmatprep.mubr.msk.f32.mxu0 %vm2556_vm1, %v2555_v2 }
 0x55a   : > { %2469 = vmatmul.mubr.msk.f32.gmra.mxu0 %vm708_vm2, %v1512_v63 }
 0x55b   : > { %2490 = vmatprep.mubr.msk.f32.mxu0 %vm2556_vm1, %v2555_v2 }
 0x612   : > { %v1695_v58 = vpop.f32.mrf.mxu0 }
 0x613   : > { %v1709_v9 = vmul.f32 0.25, %v1695_v58 }
 0x614   : > { %v2464_v11 = vpop.f32.mrf.mxu0 }
 0x615   : > { %v1712_v12 = vsel %vm1006_vm4, %v1709_v9, -inf }
 0x616   : > { %1713 = vmax.xlane.f32.xlu0 %v1712_v12  ;;  %v1700_v54 = vpop.f32.mrf.mxu0 }
 0x617   : > { %v1710_v14 = vmul.f32 0.25, %v1700_v54 }
 0x618   : > { %v2467_v57 = vpop.f32.mrf.mxu0 }
 0x619   : > { %v1715_v15 = vsel %vm1006_vm4, %v1710_v14, -inf }
 0x61a   : > { %1716 = vmax.xlane.f32.xlu1 %v1715_v15  ;;  %v1705_v28 = vpop.f32.mrf.mxu0 }
 0x61b   : > { %v1711_v29 = vmul.f32 0.25, %v1705_v28 }
 0x61c   : > { %v2470_v30 = vpop.f32.mrf.mxu0 }
 0x61d   : > { %v1718_v31 = vsel %vm1013_vm5, %v1711_v29, -inf }
 0x61e   : > { %1719 = vmax.xlane.f32.xlu0 %v1718_v31 }
 0x69f   : > { %v1714_v32 = vpop.xlane.xlu0 %1713 }
 0x6a0   : > { %v1721_v34 = vsub.f32 %v1709_v9, %v1714_v32 }
 0x6a2   : > { %v1724_v36 = vmul.f32 1.442695, %v1721_v34 }
 0x6a3   : > { %v1717_v38 = vpop.xlane.xlu1 %1716 }
 0x6a4   : > { %2535 = vpow2.f32 %v1724_v36  ;;  %v1722_v39 = vsub.f32 %v1710_v14, %v1717_v38 }
 0x6a6   : > { %v1726_v40 = vmul.f32 1.442695, %v1722_v39 }
 0x6a7   : > { %v1720_v41 = vpop.xlane.xlu0 %1719 }
 0x6a8   : > { %2537 = vpow2.f32 %v1726_v40  ;;  %v1723_v42 = vsub.f32 %v1711_v29, %v1720_v41 }
 0x6aa   : > { %v1728_v43 = vmul.f32 1.442695, %v1723_v42 }
 0x6ac   : > { %2539 = vpow2.f32 %v1728_v43 }
 0x6b1   : > { %v2536_v44 = vpop.eup %2535 }
 0x6b2   : > { %v1730_v45 = vsel %vm1006_vm4, %v2536_v44, 0.0 }
 0x6b3   : > { %1731 = vadd.xlane.f32.xlu1 %v1730_v45 }
 0x6b5   : > { %v2538_v46 = vpop.eup %2537 }
 0x6b6   : > { %v1733_v47 = vsel %vm1006_vm4, %v2538_v46, 0.0 }
 0x6b7   : > { %1734 = vadd.xlane.f32.xlu0 %v1733_v47 }
 0x6b9   : > { %v2540_v48 = vpop.eup %2539 }
 0x6ba   : > { %v1736_v49 = vsel %vm1013_vm5, %v2540_v48, 0.0 }
 0x6bb   : > { %1737 = vadd.xlane.f32.xlu1 %v1736_v49 }
 0x73c   : > { %v1732_v52 = vpop.xlane.xlu1 %1731 }
 0x73d   : > { %2541 = vrcp.f32 %v1732_v52 }
 0x740   : > { %v1735_v53 = vpop.xlane.xlu0 %1734 }
 0x741   : > { %2543 = vrcp.f32 %v1735_v53 }
 0x744   : > { %v1738_v55 = vpop.xlane.xlu1 %1737 }
 0x745   : > { %2545 = vrcp.f32 %v1738_v55 }
 0x74a   : > { %v2542_v56 = vpop.eup %2541 }
 0x74b   : > { %v1742_v59 = vmul.f32 %v2542_v56, %v2536_v44 }
 0x74d   : > { %2478 = vmatmul.mubr.msk.f32.vlgmr.msra.gmra.mxu1 %vm1006_vm4, %v1742_v59 }
 0x74e   : > { %v2544_v62 = vpop.eup %2543  ;;  %2480 = vmatprep.mubr.msk.f32.mxu1 %vm2556_vm1, %v2555_v2  ;;  %2500 = vmatpush3.msra.mxu1 %v1135_v60 }
 0x74f   : > { %v1743_v0 = vmul.f32 %v2544_v62, %v2538_v46  ;;  %2501 = vmatprep.subr.mxu1 %v2555_v2 }
 0x750   : > { %2502 = vmatpush3.msra.mxu1 %v1134_v61 }
 0x751   : > { %2481 = vmatmul.mubr.msk.f32.gmra.mxu1 %vm1006_vm4, %v1743_v0 }
 0x752   : > { %v2546_v1 = vpop.eup %2545  ;;  %2483 = vmatprep.mubr.msk.f32.mxu1 %vm2556_vm1, %v2555_v2 }
 0x753   : > { %v1744_v3 = vmul.f32 %v2546_v1, %v2540_v48 }
 0x755   : > { %2484 = vmatmul.mubr.msk.f32.gmra.mxu1 %vm1006_vm4, %v1744_v3 }
 0x756   : > { %2503 = vmatprep.mubr.msk.f32.mxu1 %vm2556_vm1, %v2555_v2 }
 0x759   : > { %2504 = vmatmul.mubr.msk.f32.vlgmr.msra.gmra.mxu1 %vm708_vm2, %v2990_v33 }
 0x75a   : > { %2506 = vmatprep.mubr.msk.f32.mxu1 %vm2556_vm1, %v2555_v2 }
 0x75d   : > { %2507 = vmatmul.mubr.msk.f32.gmra.mxu1 %vm708_vm2, %v2992_v35 }
 0x75e   : > { %2509 = vmatprep.mubr.msk.f32.mxu1 %vm2556_vm1, %v2555_v2 }
 0x761   : > { %2510 = vmatmul.mubr.msk.f32.gmra.mxu1 %vm708_vm2, %v2994_v37 }
 0x80d   : > { %v1823_v4 = vpop.f32.mrf.mxu1 }
 0x80e   : > { %2491 = vmatmul.mubr.msk.f32.vlgmr.msra.gmra.mxu0 %vm708_vm2, %v1823_v4 }
 0x80f   : > { %v2479_v6 = vpop.f32.mrf.mxu1  ;;  %2493 = vmatprep.mubr.msk.f32.mxu0 %vm2556_vm1, %v2555_v2 }
 0x811   : > { %v1828_v33 = vpop.f32.mrf.mxu1 }
 0x812   : > { %2494 = vmatmul.mubr.msk.f32.gmra.mxu0 %vm708_vm2, %v1828_v33 }
 0x813   : > { %v2482_v8 = vpop.f32.mrf.mxu1  ;;  %2496 = vmatprep.mubr.msk.f32.mxu0 %vm2556_vm1, %v2555_v2 }
 0x815   : > { %v1833_v35 = vpop.f32.mrf.mxu1 }
 0x816   : > { %2497 = vmatmul.mubr.msk.f32.gmra.mxu0 %vm708_vm2, %v1833_v35 }
 0x817   : > { %v2485_v10 = vpop.f32.mrf.mxu1 }
 0x819   : > { %v2004_v37 = vpop.f32.mrf.mxu1 }
 0x81b   : > { %v2505_v13 = vpop.f32.mrf.mxu1 }
 0x81d   : > { %v2009_v16 = vpop.f32.mrf.mxu1 }
 0x81f   : > { %v2508_v17 = vpop.f32.mrf.mxu1 }
 0x821   : > { %v2014_v18 = vpop.f32.mrf.mxu1 }
 0x823   : > { %v2511_v19 = vpop.f32.mrf.mxu1 }
 0x8ce   : > { %v1915_v20 = vpop.f32.mrf.mxu0 }
 0x8cf   : > { %v2005_v23 = vadd.f32 %v2004_v37, %v1915_v20 }
 0x8d0   : > { %v2492_v2 = vpop.f32.mrf.mxu0 }
 0x8d1   : > { %v2025_v24 = vadd.f32 %v2173_v21, %v2005_v23 }
 0x8d2   : > { %v1920_v22 = vpop.f32.mrf.mxu0 }
 0x8d3   : > { %2028 = vst.msk [vmem:[%s413_s24] sm:$0xff] %vm436_vm0, %v2025_v24  ;;  %v2010_v25 = vadd.f32 %v2009_v16, %v1920_v22 }
 0x8d4   : > { %v2495_v26 = vpop.f32.mrf.mxu0 }
 0x8d5   : > { %v2026_v5 = vadd.f32 %v2173_v21, %v2010_v25 }
 0x8d6   : > { %v1925_v7 = vpop.f32.mrf.mxu0 }
 0x8d7   : > { %2029 = vst.msk [vmem:[%s413_s24 + $0x8] sm:$0xff] %vm436_vm0, %v2026_v5  ;;  %v2015_v27 = vadd.f32 %v2014_v18, %v1925_v7 }
 0x8d8   : > { %v2498_v63 = vpop.f32.mrf.mxu0 }
 0x8d9   : > { %v2027_v58 = vadd.f32 %v2173_v21, %v2015_v27 }
 0x8db   : > { %2031 = vst.msk [vmem:[%s413_s24 + $0x10] sm:$0x1] %vm2030_vm6, %v2027_v58 }
 0x8dc PF: > { %s22_s21 = sadd.s32 1, %s2553_s21  }
 0x8dd   : > { %p19_p4 = scmp.ge.s32.totalorder %s22_s21, 4  }
 0x8df   :  { %21 = sbr.rel (!%p19_p4) target bundleno = 1 (0x1), region = 105 }

</bundles_post_ra>
